<compile_context>
chip_gen: v7x
topology: tpu7x:2x2x1
jax: 0.10.0
libtpu: 0.0.40
codegen_flags: <defaults>
</compile_context>

<pallas_src>
import functools

import jax
import jax.numpy as jnp
from jax.experimental import pallas as pl
from jax.experimental.pallas import tpu as pltpu


# ---------------------------------------------------------------------------
# Kernel
# ---------------------------------------------------------------------------
def _act_quant_kernel(x_ref, o_ref, *, scale, inv_scale):
    # Keep all math in f32 (important on v5e which has no bf16 VALU).
    x = x_ref[...].astype(jnp.float32)
    y = jnp.clip(x * jnp.float32(0.1), 0.0, 1.0)
    y = jnp.round(y * jnp.float32(scale))           # torch.round == round-half-even
    o_ref[...] = (y * jnp.float32(inv_scale)).astype(o_ref.dtype)


# ---------------------------------------------------------------------------
# Wrapper
# ---------------------------------------------------------------------------
_LANE_CANDIDATES = (1024, 512, 256, 128)


def _sublane_pack(dtype) -> int:
    # f32 -> 8, bf16/f16 -> 16, 8-bit -> 32 rows per sublane tile
    itemsize = jnp.dtype(dtype).itemsize
    return max(8, 32 // max(itemsize, 1))


def _jnp_reference(x, a_bits):
    if a_bits == 32:
        return x
    scale = float(2 ** a_bits - 1)
    y = jnp.clip(x * 0.1, 0.0, 1.0) * scale
    y = jnp.round(y)
    return (y / scale).astype(x.dtype)


def activation_quantize(
    x,
    a_bits: int,
    *,
    target_block_bytes: int = 2 * 1024 * 1024,   # ~2 MiB per input block
    min_pallas_bytes: int = 256 * 1024,          # below this, fused XLA is faster
    donate_input: bool = False,
):
    """Fake-quantize activations (NCHW or any shape; purely elementwise)."""
    if a_bits == 32:
        return x
    assert a_bits != 1, "a_bits == 1 is not supported (matches reference assert)"

    n = x.size
    itemsize = jnp.dtype(x.dtype).itemsize
    nbytes = n * itemsize

    # Pick the widest lane dim that divides the element count (lane-dense,
    # unmasked full-width stores; biggest single out_spec lever).
    lane = None
    for cand in _LANE_CANDIDATES:
        if n % cand == 0:
            lane = cand
            break

    # Fast path: tiny inputs, or element counts not divisible by 128 lanes
    # (rare for conv activations).  Plain fused XLA elementwise, no pad/slice.
    if lane is None or nbytes < min_pallas_bytes:
        return _jnp_reference(x, a_bits)

    rows = n // lane
    pack = _sublane_pack(x.dtype)

    # Block rows: target ~target_block_bytes per input block, multiple of the
    # sublane pack.  If the whole array fits in one block, use full-array dims
    # (no (8,128) divisibility requirement in that case).
    tile_rows = max(pack, (target_block_bytes // (lane * itemsize)) // pack * pack)
    if tile_rows >= rows:
        tile_rows = rows
    grid = (pl.cdiv(rows, tile_rows),)  # ragged last block is masked by Pallas

    x2d = x.reshape(rows, lane)
    scale = float(2 ** a_bits - 1)
    kernel = functools.partial(_act_quant_kernel, scale=scale, inv_scale=1.0 / scale)

    out2d = pl.pallas_call(
        kernel,
        out_shape=jax.ShapeDtypeStruct((rows, lane), x.dtype),
        grid_spec=pltpu.PrefetchScalarGridSpec(
            num_scalar_prefetch=0,
            grid=grid,
            in_specs=[pl.BlockSpec((tile_rows, lane), lambda i: (i, 0))],
            out_specs=pl.BlockSpec((tile_rows, lane), lambda i: (i, 0)),
        ),
        compiler_params=pltpu.CompilerParams(
            dimension_semantics=("parallel",),   # shards grid across TCs on v7x
        ),
        # Optional in-place update when the caller donates the activation buffer.
        input_output_aliases=({0: 0} if donate_input else {}),
    )(x2d)

    return out2d.reshape(x.shape)


# ---------------------------------------------------------------------------
# Test
# ---------------------------------------------------------------------------
if __name__ == "__main__":
    root = jax.random.PRNGKey(0)
    k0, k1 = jax.random.split(root)
    a_bits = 8

    # Primary small NCHW input (force the Pallas path even though tiny).
    x = jax.random.normal(k0, (2, 4, 16, 16), dtype=jnp.float32) * 5.0
    out = jax.block_until_ready(activation_quantize(x, a_bits, min_pallas_bytes=0))
    ref = _jnp_reference(x, a_bits)
    assert out.shape == x.shape and out.dtype == x.dtype
    assert jnp.allclose(out, ref, atol=1e-6), "mismatch vs reference (primary)"

    # Exercise a multi-block grid with a masked partial final block
    # (3*5*16*16 = 3840 elems -> lane=256, rows=15, tile_rows=8 -> grid=2).
    x2 = jax.random.normal(k1, (3, 5, 16, 16), dtype=jnp.float32) * 5.0
    out2 = jax.block_until_ready(
        activation_quantize(x2, a_bits, min_pallas_bytes=0, target_block_bytes=8 * 1024)
    )
    assert jnp.allclose(out2, _jnp_reference(x2, a_bits), atol=1e-6), \
        "mismatch vs reference (partial block)"

    # a_bits == 32 passthrough
    out32 = jax.block_until_ready(activation_quantize(x, 32))
    assert jnp.array_equal(out32, x)

    print("KERNEL_OK")
</pallas_src>

<mosaic_0001>
module attributes {stable_mosaic.version = 11 : i64} {
  func.func @_act_quant_kernel(%arg0: i32, %arg1: memref<2x1024xf32, #tpu.memory_space<vmem>>, %arg2: memref<2x1024xf32, #tpu.memory_space<vmem>>) attributes {dimension_semantics = [#tpu.dimension_semantics<parallel>], iteration_bounds = array<i64: 1>, scalar_prefetch = 0 : i64, scratch_operands = 0 : i64, tpu.core_type = #tpu.core_type<tc>, window_params = [{transform_indices = @transform_0, window_bounds = array<i64: 2, 1024>}, {transform_indices = @transform_1, window_bounds = array<i64: 2, 1024>}]} {
    %c0 = arith.constant 0 : index
    %c0_0 = arith.constant 0 : index
    %0 = vector.load %arg1[%c0, %c0_0] : memref<2x1024xf32, #tpu.memory_space<vmem>>, vector<2x1024xf32>
    %cst = arith.constant 1.000000e-01 : f32
    %1 = vector.broadcast %cst : f32 to vector<2x1024xf32>
    %2 = arith.mulf %0, %1 : vector<2x1024xf32>
    %cst_1 = arith.constant 0.000000e+00 : f32
    %cst_2 = arith.constant 1.000000e+00 : f32
    %3 = vector.broadcast %cst_1 : f32 to vector<2x1024xf32>
    %4 = arith.maximumf %3, %2 : vector<2x1024xf32>
    %5 = vector.broadcast %cst_2 : f32 to vector<2x1024xf32>
    %6 = arith.minimumf %5, %4 : vector<2x1024xf32>
    %cst_3 = arith.constant 2.550000e+02 : f32
    %7 = vector.broadcast %cst_3 : f32 to vector<2x1024xf32>
    %8 = arith.mulf %6, %7 : vector<2x1024xf32>
    %9 = math.roundeven %8 : vector<2x1024xf32>
    %cst_4 = arith.constant 0.00392156886 : f32
    %10 = vector.broadcast %cst_4 : f32 to vector<2x1024xf32>
    %11 = arith.mulf %9, %10 : vector<2x1024xf32>
    %c0_5 = arith.constant 0 : index
    %c0_6 = arith.constant 0 : index
    %12 = vector.load %arg2[%c0_5, %c0_6] : memref<2x1024xf32, #tpu.memory_space<vmem>>, vector<2x1024xf32>
    tpu.vector_store %arg2[%c0_5, %c0_6], %11 {strides = array<i32>} : memref<2x1024xf32, #tpu.memory_space<vmem>>, vector<2x1024xf32>,
    return
  }
  func.func @transform_0(%arg0: i32) -> (i32, i32) {
    %c0_i32 = arith.constant 0 : i32
    %c0_i32_0 = arith.constant 0 : i32
    return %arg0, %c0_i32 : i32, i32
  }
  func.func @transform_1(%arg0: i32) -> (i32, i32) {
    %c0_i32 = arith.constant 0 : i32
    %c0_i32_0 = arith.constant 0 : i32
    return %arg0, %c0_i32 : i32, i32
  }
}

</mosaic_0001>

<bundles_post_ra>
// kernel: tpu_custom_call.1
= control target key start
LH: loop header
LB: loop body
LE: loop exit
PB: predicated region body
PF: predicated region fallthrough
CT: control target
= control target key end

     0   :  { %6 = vsyncpa [#allocation3], 0  ;;  %s140_s0 = inlined_call_operand.hbm [shape: f32[2,1024], index: 0, kind: input, shape index: {}]   ;;  %s141_s1 = inlined_call_operand.hbm [shape: f32[2,1024], index: 1, kind: output, shape index: {}]  }
   0x1   :  { %7 = vsyncpa [#allocation4], 0  ;;  %s104_s6 = smov [#allocation2]   ;;  %s56_s10 = scalar_lea.hbm %s140_s0, 256 }
   0x2   :  { %s14_s7 = sshll.u32 %s104_s6, 4  ;;  %p57_p0 = scmp.ne.s32.totalorder %s140_s0, %s56_s10  ;;  %s15_s7 = int_to_ptr.vmem [resolvable:$true] %s14_s7 }
   0x3   :  { %p60_p1 = scmp.lt.u32.totalorder %s56_s10, %s140_s0 }
   0x5   :  { %p62_p2 = pnand %p60_p1, %p57_p0 }
   0x7   :  { %65 = shalt.err (!%p62_p2)
}
   0x8   :  { %s66_s15 = scalar_lea.vmem %s15_s7, 256  ;;  %p71_p4 = scmp.lt.s32.totalorder %s15_s7, %s15_s7 }
   0x9   :  { %p67_p3 = scmp.ne.s32.totalorder %s15_s7, %s66_s15  ;;  %p72_p5 = scmp.lt.s32.totalorder %s66_s15, %s66_s15 }
   0xb   :  { %p73_p6 = por %p72_p5, %p71_p4 }
   0xd   :  { %p74_p7 = pnand %p73_p6, %p67_p3 }
   0xf   :  { %77 = shalt.err (!%p74_p7)
}
  0x10   :  { %17 = dma.hbm_to_vmem [thread:$0]  %s140_s0, 256, %s15_s7, [#allocation3]  }
  0x11   :  { %100 = dma.done.wait [#allocation3], 256  }
  0x12   :  { %101 = vsyncadd [#allocation3], 4294967040  ;;  %v21_v0 = vld [vmem:[#allocation2] sm:$0xff]  ;;  %v22_v1 = vld [vmem:[#allocation2 + $0x8] sm:$0xff]  ;;  %s105_s18 = smov [#allocation5]  }
  0x13   :  { %v23_v2 = vmul.f32 0.1, %v21_v0  ;;  %v24_v3 = vmul.f32 0.1, %v22_v1  ;;  %s43_s19 = sshll.u32 %s105_s18, 4  ;;  %s44_s19 = int_to_ptr.vmem [resolvable:$true] %s43_s19 }
  0x14   :  { %s78_s0 = scalar_lea.vmem %s44_s19, 256  ;;  %p83_p9 = scmp.lt.s32.totalorder %s44_s19, %s44_s19 }
  0x15   :  { %v25_v4 = vmax.f32 %v23_v2, 0.0  ;;  %v26_v5 = vmax.f32 %v24_v3, 0.0  ;;  %p79_p8 = scmp.ne.s32.totalorder %s44_s19, %s78_s0  ;;  %p84_p10 = scmp.lt.s32.totalorder %s78_s0, %s78_s0 }
  0x17   :  { %v27_v6 = vmin.f32 %v25_v4, 1.0  ;;  %v28_v7 = vmin.f32 %v26_v5, 1.0  ;;  %p85_p11 = por %p84_p10, %p83_p9 }
  0x19   :  { %v29_v8 = vmul.f32 255.0, %v27_v6  ;;  %v30_v9 = vmul.f32 255.0, %v28_v7  ;;  %p86_p12 = pnand %p85_p11, %p79_p8 }
  0x1b   :  { %v52_v10 = vround.rtne.f32 %v29_v8  ;;  %v53_v11 = vround.rtne.f32 %v30_v9 }
  0x1d   :  { %v33_v12 = vmul.f32 0.003921569, %v52_v10  ;;  %v34_v13 = vmul.f32 0.003921569, %v53_v11 }
  0x1f   :  { %35 = vst [vmem:[#allocation5] sm:$0xff] %v33_v12  ;;  %36 = vst [vmem:[#allocation5 + $0x8] sm:$0xff] %v34_v13 }
  0x20   :  { %89 = shalt.err (!%p86_p12)
}
  0x21   :  { %s90_s22 = scalar_lea.hbm %s141_s1, 256 }
  0x22   :  { %p91_p13 = scmp.ne.s32.totalorder %s141_s1, %s90_s22  ;;  %p94_p0 = scmp.lt.u32.totalorder %s90_s22, %s141_s1 }
  0x24   :  { %p96_p1 = pnand %p94_p0, %p91_p13 }
  0x26   :  { %99 = shalt.err (!%p96_p1)
}
  0x27   :  { %46 = dma.vmem_to_hbm [thread:$0]  %s44_s19, 256, %s141_s1, [#allocation4]  }
  0x28   :  { %102 = dma.done.wait [#allocation4], 256  }
  0x29   :  { %103 = vsyncadd [#allocation4], 4294967040 }
  0x2a   :  { %50 = vsyncpa [#allocation3], 1 }
  0x2b   :  { %51 = vsyncpa [#allocation4], 1 }

</bundles_post_ra>
